<compile_context>
chip_gen: v5e
topology: v5e:2x2
jax: 0.10.0
libtpu: 0.0.40
codegen_flags: <defaults>
</compile_context>

<pallas_src>
import math

import jax
import jax.numpy as jnp
from jax.experimental import pallas as pl
from jax.experimental.pallas import tpu as pltpu


def _copy_kernel(x_ref, o_ref):
    # Identity copy of one (tb, tf) tile resident in VMEM.
    o_ref[...] = x_ref[...]


def _resolve_shape(shape, f):
    """Resolve an optional -1 wildcard (torch .view semantics)."""
    shape = list(shape)
    if shape.count(-1) > 1:
        raise ValueError("only one -1 wildcard allowed in target shape")
    if -1 in shape:
        known = math.prod(d for d in shape if d != -1)
        if known == 0 or f % known != 0:
            raise ValueError(f"cannot infer -1 for {shape} from {f} elements")
        shape[shape.index(-1)] = f // known
    if math.prod(shape) != f:
        raise ValueError(f"cannot view {f} elements as {tuple(shape)}")
    return tuple(shape)


def _sublane_multiple(dtype) -> int:
    # f32 -> 8, bf16/f16 -> 16, int8/fp8 -> 32 (packed sublanes per vreg).
    itemsize = jnp.dtype(dtype).itemsize
    return max(8, 32 // max(itemsize, 1))


def _pick_tile(extent: int, base: int, cap: int) -> int:
    """Largest multiple of `base` that divides `extent` and is <= cap.

    Falls back to the full extent when `extent` is not a multiple of `base`
    (full-extent blocks are exempt from the (8, 128) divisibility rule).
    Tries to leave >=2 blocks along the axis for megacore / pipelining.
    """
    if extent % base != 0:
        return extent
    t = base
    while t * 2 <= min(extent, cap) and extent % (t * 2) == 0:
        t *= 2
    if extent // t == 1 and t % (2 * base) == 0:
        t //= 2
    return t


def reshape_pallas_copy(x_flat: jax.Array) -> jax.Array:
    """Tiled, pipelined identity copy of a (B, F) slab through VMEM."""
    b, f = x_flat.shape
    dtype = x_flat.dtype
    itemsize = jnp.dtype(dtype).itemsize

    # Tiles: sublane dim a multiple of 8/16/32 (dtype-dependent), lane dim a
    # large multiple of 128 (lane-dense, unmasked stores).  Caps keep the
    # resident VMEM (2 in + 2 out buffers) well under v7x's 64 MiB / v5e's
    # 16 MiB default scoped limit (<= ~8 MiB for f32).
    tb = _pick_tile(b, _sublane_multiple(dtype), 256)
    tf = _pick_tile(f, 128, 2048)
    grid = (pl.cdiv(b, tb), pl.cdiv(f, tf))

    return pl.pallas_call(
        _copy_kernel,
        out_shape=jax.ShapeDtypeStruct((b, f), dtype),
        grid=grid,
        in_specs=[pl.BlockSpec((tb, tf), lambda i, j: (i, j))],
        out_specs=pl.BlockSpec((tb, tf), lambda i, j: (i, j)),
        input_output_aliases={0: 0},
        cost_estimate=pl.CostEstimate(
            flops=0, transcendentals=0, bytes_accessed=2 * b * f * itemsize),
        compiler_params=pltpu.CompilerParams(
            dimension_semantics=("parallel", "parallel")),
    )(x_flat)


def reshape_forward(x: jax.Array, shape, *, use_pallas_copy: bool = False) -> jax.Array:
    """Equivalent of Reshape(shape).forward(x): x (B, ...) -> (B, *shape).

    Default path is a metadata-only reshape (zero HBM traffic).  Set
    `use_pallas_copy=True` to route the data through the tiled Pallas copy
    kernel (e.g. as a fusion anchor).
    """
    b = x.shape[0]
    f = math.prod(x.shape[1:])
    target = _resolve_shape(shape, f)

    if not use_pallas_copy:
        # Highest-value change from the perf review: reshape is metadata-only.
        return jnp.reshape(x, (b, *target))

    x_flat = jnp.reshape(x, (b, f))          # row-major, matches torch .view order
    out_flat = reshape_pallas_copy(x_flat)
    return jnp.reshape(out_flat, (b, *target))


if __name__ == "__main__":
    key = jax.random.PRNGKey(0)

    # Input consistent with an NCHW conv feature map: (B=2, C=4, H=16, W=16).
    x = jax.random.normal(key, (2, 4, 16, 16), dtype=jnp.float32)
    target_shape = [16, 64]
    ref = jnp.reshape(x, (x.shape[0], *target_shape))

    # 1) Preferred zero-cost path (no kernel).
    out_fast = jax.block_until_ready(reshape_forward(x, target_shape))
    assert out_fast.shape == (2, 16, 64) and out_fast.dtype == x.dtype
    assert jnp.array_equal(out_fast, ref)

    # 2) Pallas tiled-copy path (exercises the kernel once).
    out_kernel = jax.block_until_ready(
        reshape_forward(x, target_shape, use_pallas_copy=True))
    assert out_kernel.shape == (2, 16, 64) and out_kernel.dtype == x.dtype
    assert jnp.array_equal(out_kernel, ref)

    # 3) bf16 + wildcard (-1) shape through the kernel path (sublane=16 tiling).
    x_bf16 = x.astype(jnp.bfloat16)
    out_bf16 = jax.block_until_ready(
        reshape_forward(x_bf16, [-1], use_pallas_copy=True))
    assert out_bf16.shape == (2, 1024) and out_bf16.dtype == jnp.bfloat16
    assert jnp.array_equal(out_bf16, jnp.reshape(x_bf16, (2, 1024)))

    print("KERNEL_OK")
</pallas_src>

<mosaic_0001>
module attributes {stable_mosaic.version = 11 : i64} {
  func.func @_copy_kernel(%arg0: i32, %arg1: i32, %arg2: memref<2x512xf32, #tpu.memory_space<vmem>>, %arg3: memref<2x512xf32, #tpu.memory_space<vmem>>) attributes {dimension_semantics = [#tpu.dimension_semantics<parallel>, #tpu.dimension_semantics<parallel>], iteration_bounds = array<i64: 1, 2>, scalar_prefetch = 0 : i64, scratch_operands = 0 : i64, tpu.core_type = #tpu.core_type<tc>, window_params = [{transform_indices = @transform_0, window_bounds = array<i64: 2, 512>}, {transform_indices = @transform_1, window_bounds = array<i64: 2, 512>}]} {
    %c0 = arith.constant 0 : index
    %c0_0 = arith.constant 0 : index
    %0 = vector.load %arg2[%c0, %c0_0] : memref<2x512xf32, #tpu.memory_space<vmem>>, vector<2x512xf32>
    %c0_1 = arith.constant 0 : index
    %c0_2 = arith.constant 0 : index
    %1 = vector.load %arg3[%c0_1, %c0_2] : memref<2x512xf32, #tpu.memory_space<vmem>>, vector<2x512xf32>
    tpu.vector_store %arg3[%c0_1, %c0_2], %0 {strides = array<i32>} : memref<2x512xf32, #tpu.memory_space<vmem>>, vector<2x512xf32>,
    return
  }
  func.func @transform_0(%arg0: i32, %arg1: i32) -> (i32, i32) {
    %c0_i32 = arith.constant 0 : i32
    return %arg0, %arg1 : i32, i32
  }
  func.func @transform_1(%arg0: i32, %arg1: i32) -> (i32, i32) {
    %c0_i32 = arith.constant 0 : i32
    return %arg0, %arg1 : i32, i32
  }
}

</mosaic_0001>

<bundles_post_ra>
// kernel: tpu_custom_call.1
= control target key start
LH: loop header
LB: loop body
LE: loop exit
PB: predicated region body
PF: predicated region fallthrough
CT: control target
= control target key end

     0   :  { %6 = vsyncpa [#allocation3], 0  ;;  %s583_s0 = inlined_call_operand.hbm [shape: f32[2,1024], index: 0, kind: input, shape index: {}, may-alias: {0,1}]   ;;  %s584_s1 = inlined_call_operand.hbm [shape: f32[2,1024], index: 1, kind: output, shape index: {}, may-alias: {0,1}]  }
   0x1   :  { %8 = vsyncpa [#allocation3 + $0x1], 0 }
   0x2   :  { %9 = vsyncpa [#allocation4], 0 }
   0x3   :  { %11 = vsyncpa [#allocation4 + $0x1], 0  ;;  %s463_s6 = smov 0   ;;  %s465_s7 = smov 0  }
   0x4   :  { %s467_s8 = smov 0   ;;  %s469_s9 = smov 0  }
   0x5   :  { %s471_s10 = smov 0   ;;  %s473_s11 = smov 0  }
   0x6 LB: > { %s260_s12 = sadd.s32 4294967295, %s451_s11   ;;  %s261_s13 = sadd.s32 4294967294, %s451_s11   ;;  %s451_s11 = sphi %s473_s11, %s17_s11   ;;  %s447_s10 = sphi %s471_s10, %s593_s10   ;;  %s443_s9 = sphi %s469_s9, %s592_s9   ;;  %s439_s8 = sphi %s467_s8, %s591_s8   ;;  %s435_s7 = sphi %s465_s7, %s590_s7   ;;  %s431_s6 = sphi %s463_s6, %s589_s6  }
   0x7   : > { %s26_s14 = sadd.s32 1, %s447_s10  ;;  %s38_s15 = sadd.s32 1, %s439_s8 }
   0x8   : > { %p27_p0 = scmp.ge.s32.totalorder %s26_s14, 2  ;;  %p45_p1 = scmp.ne.s32.totalorder %s439_s8, %s435_s7 }
   0x9   : > { %p46_p2 = scmp.eq.s32.totalorder %s451_s11, 0  ;;  %p51_p3 = scmp.ne.s32.totalorder %s435_s7, %s431_s6 }
   0xa   : > { %s595_s14 = smov (%p27_p0, %s26_s14), 0  ;;  %p52_p5 = scmp.eq.s32.totalorder %s260_s12, 0 }
   0xb   : > { %p504_p4 = por %p46_p2, %p45_p1  ;;  %s34_s17 = ssub.s32 %s447_s10, %s595_s14 }
   0xc   : > { %p77_p6 = scmp.eq.s32.totalorder %s260_s12, 1  ;;  %p36_p7 = scmp.eq.s32.totalorder %s34_s17, 0 }
   0xd   : > { %p510_p8 = por %p52_p5, %p51_p3  ;;  %p83_p10 = scmp.eq.s32.totalorder %s261_s13, 1 }
   0xe   : > { %p514_p9 = por %p77_p6, %p45_p1  ;;  %p263_p12 = scmp.ge.s32.totalorder %s451_s11, 2 }
   0xf   : > { %s519_s20 = scalar_select %p36_p7, %s439_s8, %s38_s15  }
  0x10   : > { %p521_p11 = por %p83_p10, %p51_p3  ;;  %p289_p13 = scmp.lt.s32.totalorder %s451_s11, 2 }
  0x11   : > { %s103_s22 = sand.u32 1, %s439_s8   ;;  %s275_s24 = sshll.u32 %s447_s10, 3 }
  0x12   : > { %s264_s23 = sshll.u32 %s103_s22, 3  ;;  %s114_s27 = scalar_lea.hbm %s583_s0, %s275_s24 }
  0x13   : > { %s107_s28 = scalar_lea.vmem [#allocation2], %s264_s23  ;;  %s116_s30 = sshll.u32 %s114_s27, 4  ;;  %s117_s30 = int_to_ptr.hbm [resolvable:$true] %s116_s30 }
  0x14   : > { %s118_s29 = sshll.u32 %s107_s28, 4  ;;  %p282_p0 = pnand %p289_p13, %p504_p4  ;;  %s119_s29 = int_to_ptr.vmem [resolvable:$true] %s118_s29 }
  0x15   : > { %p267_p1 = scmp.ge.s32.totalorder %s451_s11, 1  ;;  %p123_p2 = scmp.lt.s32.totalorder %s451_s11, 3 }
  0x16   : > { %s104_s2 = scalar_lea.sflag [#allocation3], %s103_s22 }
  0x17   : > { %284 = dma.hbm_to_vmem [thread:$0]  (!%p282_p0), %s117_s30, 128, %s119_s29, %s104_s2  }
  0x18   : > { %p124_p3 = pnand %p267_p1, %p123_p2 }
  0x19   : > { %s537_s3 = sand.u32 (!%p124_p3), 1, %s435_s7  }
  0x1a   : > { %127 = sbr.rel (%p124_p3) target bundleno = 47 (0x2f), region = 24  ;;  %s268_s4 = sshll.u32 (!%p124_p3), %s537_s3, 3 }
  0x1b   : > { %s130_s5 = scalar_lea.sflag (!%p124_p3), [#allocation3], %s537_s3  ;;  %s133_s12 = scalar_lea.vmem (!%p124_p3), [#allocation2], %s268_s4 }
  0x1f   : > { %422 = dma.done.wait (%p510_p8), %s130_s5, 128  }
  0x20   : > { %424 = vsyncadd (%p510_p8), %s130_s5, 4294967168  ;;  %s276_s13 = sshll.u32 %s443_s9, 3  ;;  %s152_s22 = scalar_lea.vmem [#allocation5], %s268_s4  ;;  %v155_v0 = vld [vmem:[%s133_s12] sm:$0xff] }
  0x21   : > { %s171_s17 = scalar_lea.hbm %s584_s1, %s276_s13  ;;  %s173_s23 = sshll.u32 %s152_s22, 4  ;;  %156 = vst [vmem:[%s152_s22] sm:$0xff] %v155_v0  ;;  %s174_s23 = int_to_ptr.vmem [resolvable:$true] %s173_s23 }
  0x22   : > { %s175_s24 = sshll.u32 %s171_s17, 4  ;;  %s158_s25 = scalar_lea.sflag [#allocation4], %s537_s3  ;;  %s176_s24 = int_to_ptr.hbm [resolvable:$true] %s175_s24 }
  0x23   : > { %s383_s26 = sshra.s32 %s176_s24, 4  ;;  %s389_s28 = scalar_lea.hbm %s584_s1, 16  ;;  %s384_s26 = int_to_ptr.hbm [resolvable:$true] %s383_s26 }
  0x24   : > { %s385_s18 = scalar_lea.hbm %s384_s26, 8  ;;  %p390_p7 = scmp.lt.s32.totalorder %s384_s26, %s584_s1 }
  0x25   : > { %p386_p4 = scmp.ne.s32.totalorder %s384_s26, %s385_s18  ;;  %p391_p8 = scmp.lt.s32.totalorder %s389_s28, %s385_s18 }
  0x27   : > { %p387_p5 = pnand %p386_p4, %p514_p9  ;;  %p392_p10 = por %p391_p8, %p390_p7 }
  0x29   : > { %p388_p6 = pneg %p387_p5 }
  0x2b   : > { %p393_p13 = pnand %p392_p10, %p388_p6 }
  0x2d   : > { %396 = shalt.err (!%p393_p13)
}
  0x2e   : > { %279 = dma.vmem_to_hbm [thread:$0]  (%p514_p9), %s174_s23, 128, %s176_s24, %s158_s25  }
  0x2f PF: > { %s187_s2 = sand.u32 1, %s431_s6   ;;  %p286_p0 = pnand %p263_p12, %p521_p11 }
  0x30   : > { %s188_s3 = scalar_lea.sflag [#allocation4], %s187_s2 }
  0x31   : > { %p287_p1 = pneg %p286_p0 }
  0x33   : > { %426 = dma.done.wait (%p287_p1), %s188_s3, 128  }
  0x34   : > { %428 = vsyncadd (%p287_p1), %s188_s3, 4294967168  ;;  %s17_s11 = sadd.s32 1, %s451_s11   ;;  %s589_s6 = smov %s435_s7 }
  0x35   : > { %p14_p2 = scmp.ge.s32.totalorder %s17_s11, 4   ;;  %s590_s7 = smov %s439_s8 }
  0x36   : > { %s591_s8 = smov %s519_s20  ;;  %s592_s9 = smov %s447_s10 }
  0x37   : > { %s593_s10 = smov %s595_s14  ;;  %16 = sbr.rel (!%p14_p2) target bundleno = 6 (0x6), region = 69 }
  0x3c   :  { %194 = vsyncpa [#allocation3], 1 }
  0x3d   :  { %196 = vsyncpa [#allocation3 + $0x1], 1 }
  0x3e   :  { %197 = vsyncpa [#allocation4], 1 }
  0x3f   :  { %199 = vsyncpa [#allocation4 + $0x1], 1 }

</bundles_post_ra>
